<compile_context>
chip_gen: v7x
topology: tpu7x:2x2x1
jax: 0.10.0
libtpu: 0.0.40
codegen_flags: <defaults>
</compile_context>

<pallas_src>
import jax
import jax.numpy as jnp
from jax import lax
from jax.experimental import pallas as pl
from jax.experimental.pallas import tpu as pltpu


def _attention_kernel(x_ref, w_ref, b_ref, o_ref):
    """x_ref: (TB, T, H) VMEM   w_ref: (H, 1) VMEM   b_ref: (1,) SMEM
    o_ref: (TB, H) VMEM."""
    x = x_ref[...].astype(jnp.float32)                      # (TB, T, H)
    w = w_ref[...].astype(jnp.float32)                      # (H, 1)

    # Linear(H, 1): one MXU matmul contracting the feature dim.
    scores = lax.dot_general(
        x, w,
        dimension_numbers=(((2,), (0,)), ((), ())),
        preferred_element_type=jnp.float32)                 # (TB, T, 1)
    scores = scores + b_ref[0]

    # Numerically-stable softmax over the sequence dim (axis=1).
    m = jnp.max(scores, axis=1, keepdims=True)              # (TB, 1, 1)
    e = jnp.exp(scores - m)                                 # (TB, T, 1)
    denom = jnp.sum(e, axis=1, keepdims=True)               # (TB, 1, 1)
    attn = e * pl.reciprocal(denom, approx=True)            # (TB, T, 1)

    # context = sum_t attn[b,t] * x[b,t,:]  ==  batched (1,T)@(T,H) on the MXU.
    ctx = lax.dot_general(
        attn, x,
        dimension_numbers=(((1,), (1,)), ((0,), (0,))),
        preferred_element_type=jnp.float32)                 # (TB, 1, H)

    o_ref[...] = ctx[:, 0, :].astype(o_ref.dtype)


def attention_layer(lstm_out, w_att, b_att):
    """lstm_out: (B, T, H)   w_att: (1, H)   b_att: (1,)  ->  (B, H)."""
    B, T, H = lstm_out.shape

    # Batch tile: 8 sublanes when possible (pad B up), otherwise the full batch.
    if B >= 8:
        tb = 8
        pad = (-B) % tb
    else:
        tb = B
        pad = 0
    if pad:
        lstm_out = jnp.pad(lstm_out, ((0, pad), (0, 0), (0, 0)))
    bp = B + pad

    out = pl.pallas_call(
        _attention_kernel,
        out_shape=jax.ShapeDtypeStruct((bp, H), lstm_out.dtype),
        grid_spec=pltpu.PrefetchScalarGridSpec(
            num_scalar_prefetch=0,
            grid=(bp // tb,),
            in_specs=[
                pl.BlockSpec((tb, T, H), lambda i: (i, 0, 0)),
                pl.BlockSpec((H, 1), lambda i: (0, 0)),
                pl.BlockSpec(memory_space=pltpu.MemorySpace.SMEM),
            ],
            out_specs=pl.BlockSpec((tb, H), lambda i: (i, 0)),
        ),
        compiler_params=pltpu.CompilerParams(
            # v7x: batch tiles shard across the 2 TensorCores.
            dimension_semantics=("parallel",),
            vmem_limit_bytes=32 * 1024 * 1024,
        ),
    )(lstm_out,
      jnp.reshape(w_att, (H, 1)),   # (1, H) weight -> (H, 1) column, done once
      jnp.reshape(b_att, (1,)))

    return out[:B]


def _attention_ref(lstm_out, w_att, b_att):
    """Pure-JAX reference matching the PyTorch module."""
    scores = lstm_out @ w_att.T + b_att                     # (B, T, 1)
    attn = jax.nn.softmax(scores, axis=1)
    return jnp.sum(attn * lstm_out, axis=1)                 # (B, H)


if __name__ == "__main__":
    # Small but (8, 128)-aligned shapes -> lane-dense, unmasked stores.
    B, T, H = 16, 16, 128

    key = jax.random.PRNGKey(0)
    k_x, k_w, k_b = jax.random.split(key, 3)
    lstm_out = jax.random.normal(k_x, (B, T, H), jnp.float32)
    bound = 1.0 / jnp.sqrt(jnp.float32(H))
    w_att = jax.random.uniform(k_w, (1, H), jnp.float32, -bound, bound)
    b_att = jax.random.uniform(k_b, (1,), jnp.float32, -bound, bound)

    fwd = jax.jit(attention_layer)
    out = fwd(lstm_out, w_att, b_att)
    jax.block_until_ready(out)

    assert out.shape == (B, H), out.shape
    ref = _attention_ref(lstm_out, w_att, b_att)
    assert jnp.allclose(out, ref, rtol=1e-2, atol=1e-3), \
        float(jnp.max(jnp.abs(out - ref)))
    print("KERNEL_OK")
</pallas_src>

<mosaic_0001>
module attributes {stable_mosaic.version = 11 : i64} {
  func.func @_attention_kernel(%arg0: i32, %arg1: memref<8x16x128xf32, #tpu.memory_space<vmem>>, %arg2: memref<128x1xf32, #tpu.memory_space<vmem>>, %arg3: memref<1xf32, #tpu.memory_space<smem>>, %arg4: memref<8x128xf32, #tpu.memory_space<vmem>>) attributes {dimension_semantics = [#tpu.dimension_semantics<parallel>], iteration_bounds = array<i64: 2>, scalar_prefetch = 0 : i64, scratch_operands = 0 : i64, tpu.core_type = #tpu.core_type<tc>, window_params = [{transform_indices = @transform_0, window_bounds = array<i64: 8, 16, 128>}, {pipeline_mode = #tpu.pipeline_mode<synchronous>, transform_indices = @transform_1, window_bounds = array<i64: 128, 1>}, {transform_indices = @transform_2, window_bounds = array<i64: 1>}, {transform_indices = @transform_3, window_bounds = array<i64: 8, 128>}]} {
    %c0 = arith.constant 0 : index
    %c0_0 = arith.constant 0 : index
    %c0_1 = arith.constant 0 : index
    %0 = vector.load %arg1[%c0, %c0_0, %c0_1] : memref<8x16x128xf32, #tpu.memory_space<vmem>>, vector<8x16x128xf32>
    %c0_2 = arith.constant 0 : index
    %c0_3 = arith.constant 0 : index
    %1 = vector.load %arg2[%c0_2, %c0_3] : memref<128x1xf32, #tpu.memory_space<vmem>>, vector<128x1xf32>
    %cst = arith.constant dense<0.000000e+00> : vector<8x16x1xf32>
    %2 = tpu.matmul %0, %1, %cst {dimension_numbers = #tpu.dot_dimension_numbers<[2], [0], [0, 1], [1], [0, 0, 0, 1, 1, 1], [], []>} : vector<8x16x128xf32>, vector<128x1xf32>, vector<8x16x1xf32> -> vector<8x16x1xf32>
    %c0_4 = arith.constant 0 : index
    %3 = memref.load %arg3[%c0_4] : memref<1xf32, #tpu.memory_space<smem>>
    %4 = vector.broadcast %3 : f32 to vector<8x16x1xf32>
    %5 = arith.addf %2, %4 : vector<8x16x1xf32>
    %cst_5 = arith.constant dense<0xFF800000> : vector<8x1xf32>
    %6 = vector.multi_reduction <maximumf>, %5, %cst_5 [1] : vector<8x16x1xf32> to vector<8x1xf32>
    %7 = vector.shape_cast %6 : vector<8x1xf32> to vector<8x1x1xf32>
    %8 = vector.broadcast %7 : vector<8x1x1xf32> to vector<8x16x1xf32>
    %9 = arith.subf %5, %8 : vector<8x16x1xf32>
    %10 = math.exp %9 : vector<8x16x1xf32>
    %cst_6 = arith.constant dense<0.000000e+00> : vector<8x1xf32>
    %11 = vector.multi_reduction <add>, %10, %cst_6 [1] : vector<8x16x1xf32> to vector<8x1xf32>
    %12 = vector.shape_cast %11 : vector<8x1xf32> to vector<8x1x1xf32>
    %13 = tpu.reciprocal %12 {approx = true} : vector<8x1x1xf32> -> vector<8x1x1xf32>
    %14 = vector.broadcast %13 : vector<8x1x1xf32> to vector<8x16x1xf32>
    %15 = arith.mulf %10, %14 : vector<8x16x1xf32>
    %cst_7 = arith.constant dense<0.000000e+00> : vector<8x1x128xf32>
    %16 = tpu.matmul %15, %0, %cst_7 {dimension_numbers = #tpu.dot_dimension_numbers<[1], [1], [2], [2], [0, 0, 0, 2, 1, 2], [0], [0]>} : vector<8x16x1xf32>, vector<8x16x128xf32>, vector<8x1x128xf32> -> vector<8x1x128xf32>
    %17 = vector.shape_cast %16 : vector<8x1x128xf32> to vector<8x128xf32>
    %c0_8 = arith.constant 0 : index
    %c0_9 = arith.constant 0 : index
    %18 = vector.load %arg4[%c0_8, %c0_9] : memref<8x128xf32, #tpu.memory_space<vmem>>, vector<8x128xf32>
    tpu.vector_store %arg4[%c0_8, %c0_9], %17 {strides = array<i32>} : memref<8x128xf32, #tpu.memory_space<vmem>>, vector<8x128xf32>,
    return
  }
  func.func @transform_0(%arg0: i32) -> (i32, i32, i32) {
    %c0_i32 = arith.constant 0 : i32
    %c0_i32_0 = arith.constant 0 : i32
    %c0_i32_1 = arith.constant 0 : i32
    return %arg0, %c0_i32, %c0_i32_0 : i32, i32, i32
  }
  func.func @transform_1(%arg0: i32) -> (i32, i32) {
    %c0_i32 = arith.constant 0 : i32
    %c0_i32_0 = arith.constant 0 : i32
    %c0_i32_1 = arith.constant 0 : i32
    return %c0_i32, %c0_i32_0 : i32, i32
  }
  func.func @transform_2(%arg0: i32) -> i32 {
    %c0_i32 = arith.constant 0 : i32
    %c0_i32_0 = arith.constant 0 : i32
    return %c0_i32 : i32
  }
  func.func @transform_3(%arg0: i32) -> (i32, i32) {
    %c0_i32 = arith.constant 0 : i32
    %c0_i32_0 = arith.constant 0 : i32
    return %arg0, %c0_i32 : i32, i32
  }
}

</mosaic_0001>

<bundles_post_ra>
// kernel: attention_layer.1
= control target key start
LH: loop header
LB: loop body
LE: loop exit
PB: predicated region body
PF: predicated region fallthrough
CT: control target
= control target key end

     0   :  { %s2517_s0 = inlined_call_operand.hbm [shape: f32[16,16,128], index: 0, kind: input, shape index: {}]   ;;  %s2518_s1 = inlined_call_operand.vmem [shape: f32[128,1], index: 1, kind: input, shape index: {}]   ;;  %s2519_s2 = inlined_call_operand.<no memory space> [shape: f32[1], index: 2, kind: input, shape index: {}]   ;;  %s2520_s3 = inlined_call_operand.hbm [shape: f32[16,128], index: 3, kind: output, shape index: {}]  }
   0x1   :  { %8 = sst [smem:[#allocation2]] %s2519_s2 }
   0x2   :  { %9 = vsyncpa [#allocation4], 0 }
   0x3   :  { %11 = vsyncpa [#allocation4 + $0x1], 0 }
   0x4   :  { %12 = vsyncpa [#allocation5], 0 }
   0x5   :  { %14 = vsyncpa [#allocation5 + $0x1], 0  ;;  %s2019_s14 = smov 0   ;;  %s2021_s15 = smov 0  }
   0x6   :  { %s2023_s16 = smov 0   ;;  %s2025_s17 = smov 0  }
   0x7 LB: > { %s2040_s2 = sadd.s32 4294967295, %s1987_s17   ;;  %s1544_s18 = sadd.s32 4294967294, %s1987_s17   ;;  %s1987_s17 = sphi %s2025_s17, %s2533_s17   ;;  %s1983_s16 = sphi %s2023_s16, %s2532_s16   ;;  %s1979_s15 = sphi %s2021_s15, %s2531_s15   ;;  %s1975_s14 = sphi %s2019_s14, %s2530_s14  }
   0x8   : > { %s2044_s19 = sadd.s32 1, %s1987_s17   ;;  %s27_s20 = sadd.s32 1, %s1983_s16 }
   0x9   : > { %s24_s21 = ssub.s32 %s1987_s17, %s2044_s19  ;;  %p34_p0 = scmp.ne.s32.totalorder %s1983_s16, %s1979_s15 }
   0xa   : > { %p25_p1 = scmp.eq.s32.totalorder %s24_s21, 0  ;;  %p35_p2 = scmp.eq.s32.totalorder %s1987_s17, 0 }
   0xb   : > { %p40_p3 = scmp.ne.s32.totalorder %s1979_s15, %s1975_s14  ;;  %p41_p4 = scmp.eq.s32.totalorder %s2040_s2, 0 }
   0xc   : > { %s2056_s22 = scalar_select %p25_p1, %s1983_s16, %s27_s20  }
   0xd   : > { %p2058_p5 = por %p35_p2, %p34_p0  ;;  %p2062_p6 = por %p41_p4, %p40_p3 }
   0xe   : > { %p106_p7 = scmp.eq.s32.totalorder %s2040_s2, 1  ;;  %p112_p8 = scmp.eq.s32.totalorder %s1544_s18, 1 }
   0xf   : > { %p1804_p10 = scmp.lt.s32.totalorder %s1987_s17, 2  ;;  %s138_s27 = sand.u32 1, %s1983_s16  }
  0x10   : > { %p2069_p11 = por %p106_p7, %p34_p0  ;;  %p2073_p12 = por %p112_p8, %p40_p3 }
  0x11   : > { %s1567_s28 = sshll.u32 %s1987_s17, 11  ;;  %s1547_s29 = sshll.u32 %s138_s27, 7 }
  0x12   : > { %s2524_s25 = scalar_select %p2069_p11, 1, 0 }
  0x13   : > { %s2525_s26 = scalar_select %p2073_p12, 1, 0 }
  0x14   : > { %s2082_s5 = scalar_lea.hbm %s2517_s0, %s1567_s28  ;;  %s142_s6 = scalar_lea.vmem [#allocation3], %s1547_s29 }
  0x15   : > { %s150_s7 = sshll.u32 %s142_s6, 4  ;;  %p2086_p13 = pnand %p1804_p10, %p2058_p5  ;;  %s2090_s7 = int_to_ptr.vmem [resolvable:$true] %s150_s7 }
  0x16   : > { %s2092_s9 = scalar_lea.sflag [#allocation4], %s138_s27  ;;  %s1891_s10 = scalar_lea.hbm %s2082_s5, 2048 }
  0x17   : > { %p1892_p0 = scmp.ne.s32.totalorder %s2082_s5, %s1891_s10  ;;  %p1893_p1 = pneg %p2086_p13 }
  0x18   : > { %s1896_s13 = scalar_lea.hbm %s2517_s0, 4096  ;;  %p1897_p4 = scmp.lt.u32.totalorder %s2082_s5, %s2517_s0 }
  0x19   : > { %p1894_p2 = pnand %p1893_p1, %p1892_p0  ;;  %p1898_p5 = scmp.lt.u32.totalorder %s1896_s13, %s1891_s10 }
  0x1a   : > { %p1900_p8 = scmp.lt.u32.totalorder %s1891_s10, %s2082_s5 }
  0x1b   : > { %p1895_p3 = pneg %p1894_p2  ;;  %p1899_p7 = por %p1898_p5, %p1897_p4 }
  0x1d   : > { %p1901_p10 = por %p1900_p8, %p1899_p7 }
  0x1f   : > { %p1902_p9 = pnand %p1901_p10, %p1895_p3 }
  0x21   : > { %1905 = shalt.err (!%p1902_p9)
}
  0x22   : > { %s1906_s21 = scalar_lea.vmem %s2090_s7, 2048  ;;  %s1989_s23 = smov [#allocation3]  }
  0x23   : > { %p1907_p0 = scmp.ne.s32.totalorder %s2090_s7, %s1906_s21  ;;  %s1911_s27 = sshll.u32 %s1989_s23, 4  ;;  %s1912_s27 = int_to_ptr.vmem [resolvable:$false] %s1911_s27 }
  0x24   : > { %s1913_s28 = scalar_lea.vmem %s1912_s27, 4096  ;;  %p1914_p11 = scmp.lt.s32.totalorder %s2090_s7, %s1912_s27 }
  0x25   : > { %p1909_p2 = pnand %p1907_p0, %p1893_p1  ;;  %p1915_p4 = scmp.lt.s32.totalorder %s1913_s28, %s1906_s21 }
  0x27   : > { %p1910_p12 = pneg %p1909_p2  ;;  %p1916_p5 = por %p1915_p4, %p1914_p11 }
  0x29   : > { %p1917_p7 = pnand %p1916_p5, %p1910_p12 }
  0x2b   : > { %1920 = shalt.err (!%p1917_p7)
}
  0x2c   : > { %s1990_s29 = smov 128   ;;  %s1991_s30 = smov 8  }
  0x2d   : > { %1799 = dma.hbm_to_vmem [thread:$0]  (!%p2086_p13), %s2082_s5, 2048, %s2090_s7, %s2092_s9, %s1990_s29, %s1990_s29, %s1991_s30  }
  0x2e   : > { %p1551_p9 = scmp.ge.s32.totalorder %s1987_s17, 1  ;;  %p158_p1 = scmp.lt.s32.totalorder %s1987_s17, 3 }
  0x30   : > { %p159_p3 = pnand %p1551_p9, %p158_p1 }
  0x31   : > { %s2123_s4 = sand.u32 (!%p159_p3), 1, %s1979_s15  }
  0x32   : > { %162 = sbr.rel (%p159_p3) target bundleno = 756 (0x2f4), region = 32  ;;  %s1552_s6 = sshll.u32 (!%p159_p3), %s2123_s4, 7 }
  0x33   : > { %s165_s10 = scalar_lea.sflag (!%p159_p3), [#allocation4], %s2123_s4  ;;  %s2127_s11 = scalar_lea.vmem (!%p159_p3), [#allocation3], %s1552_s6 }
  0x39   : > { %1966 = dma.done.wait (%p2062_p6), %s165_s10, 2048  }
  0x3a   : > { %1968 = vsyncadd (%p2062_p6), %s165_s10, 4294965248  ;;  %v208_v0 = vld [vmem:[%s2518_s1] sm:$0xff]  ;;  %v209_v1 = vld [vmem:[%s2518_s1 + $0x8] sm:$0xff]  ;;  %v1992_v48 = vmov 0.0|0.0   ;;  %vm1993_vm0 = vmmov 0   ;;  %v1994_v49 = vmov 0.0  }
  0x3b   : > { %v210_v2 = vld [vmem:[%s2518_s1 + $0x10] sm:$0xff]  ;;  %v1736_v3 = vpack.c.bf16 %v209_v1, %v208_v0  ;;  %v211_v4 = vld [vmem:[%s2518_s1 + $0x18] sm:$0xff]  ;;  %v212_v6 = vld [vmem:[%s2518_s1 + $0x20] sm:$0xff]  ;;  %1768 = vmatprep.subr.bf16.mxu1 %v1992_v48  ;;  %1684 = vmatprep.mubr.msk.f32.mxu1 %vm1993_vm0, %v1994_v49  ;;  %vm371_vm1 = vcmask 7168   ;;  %vm620_vm2 = vcmask 130048   ;;  %vm1438_vm3 = vcmask 1041409  }
  0x3c   : > { %v1740_v5 = vpack.c.bf16 %v211_v4, %v210_v2  ;;  %v213_v7 = vld [vmem:[%s2518_s1 + $0x28] sm:$0xff]  ;;  %v214_v9 = vld [vmem:[%s2518_s1 + $0x30] sm:$0xff]  ;;  %v215_v10 = vld [vmem:[%s2518_s1 + $0x38] sm:$0xff]  ;;  %vm1441_vm4 = vcmask 1042434   ;;  %vm1444_vm5 = vcmask 1043459   ;;  %vm1447_vm6 = vcmask 1044484  }
  0x3d   : > { %1737 = vmatprep.subr.bf16.mxu0 %v1736_v3  ;;  %v1744_v8 = vpack.c.bf16 %v213_v7, %v212_v6  ;;  %v2158_v11 = vld [vmem:[%s2127_s11] sm:$0xff]  ;;  %v2162_v12 = vld [vmem:[%s2127_s11 + $0x10] sm:$0xff]  ;;  %v2165_v13 = vld [vmem:[%s2127_s11 + $0x18] sm:$0xff]  ;;  %v1748_v25 = vpack.c.bf16 %v215_v10, %v214_v9  ;;  %vm1450_vm7 = vcmask 1045509   ;;  %s1553_s6 = sshll.u32 %s2123_s4, 3  ;;  %vm1453_vm8 = vcmask 1046534  }
  0x3e   : > { %1739 = vmatpush3.bf16.msra.mxu0 %v1736_v3  ;;  %1656 = vmatprep.mubr.f32.mxu0 %v2158_v11  ;;  %v2168_v14 = vld [vmem:[%s2127_s11 + $0x20] sm:$0xff]  ;;  %v1772_v15 = vpack.c.bf16 %v2165_v13, %v2162_v12  ;;  %v2173_v16 = vld [vmem:[%s2127_s11 + $0x28] sm:$0xff]  ;;  %v2176_v17 = vld [vmem:[%s2127_s11 + $0x30] sm:$0xff]  ;;  %s1563_s10 = sshll.u32 %s2040_s2, 7  ;;  %s190_s5 = scalar_lea.vmem [#allocation6], %s1553_s6  ;;  %vm1456_vm9 = vcmask 1047559  }
  0x3f   : > { %1741 = vmatprep.subr.bf16.mxu0 %v1740_v5  ;;  %v2179_v18 = vld [vmem:[%s2127_s11 + $0x38] sm:$0xff]  ;;  %v216_v19 = vld [vmem:[%s2518_s1 + $0x40] sm:$0xff]  ;;  %v1775_v20 = vpack.c.bf16 %v2173_v16, %v2168_v14  ;;  %v2192_v23 = vld [vmem:[%s2127_s11 + $0x48] sm:$0xff]  ;;  %s1474_s7 = sshll.u32 %s190_s5, 4  ;;  %s2473_s12 = scalar_lea.hbm %s2520_s3, %s1563_s10  ;;  %s2475_s7 = int_to_ptr.vmem [resolvable:$true] %s1474_s7 }
  0x40   : > { %v1778_v21 = vpack.c.bf16 %v2179_v18, %v2176_v17  ;;  %v2189_v22 = vld [vmem:[%s2127_s11 + $0x40] sm:$0xff]  ;;  %v2195_v24 = vld [vmem:[%s2127_s11 + $0x50] sm:$0xff]  ;;  %v2200_v27 = vld [vmem:[%s2127_s11 + $0x58] sm:$0xff]  ;;  %s1461_s13 = scalar_lea.sflag [#allocation5], %s2123_s4  ;;  %s1921_s2 = scalar_lea.vmem %s2475_s7, 128 }
  0x41   : > { %v1781_v26 = vpack.c.bf16 %v2192_v23, %v2189_v22  ;;  %v2203_v28 = vld [vmem:[%s2127_s11 + $0x60] sm:$0xff]  ;;  %v2206_v29 = vld [vmem:[%s2127_s11 + $0x68] sm:$0xff]  ;;  %v1784_v31 = vpack.c.bf16 %v2200_v27, %v2195_v24  ;;  %v2216_v33 = vld [vmem:[%s2127_s11 + $0x70] sm:$0xff]  ;;  %p1922_p6 = scmp.ne.s32.totalorder %s2475_s7, %s1921_s2  ;;  %p2527_p11 = scmp.ne.s32.totalorder %s2524_s25, 0 }
  0x42   : > { %1743 = vmatpush3.bf16.msra.mxu0 %v1740_v5  ;;  %v217_v30 = vld [vmem:[%s2518_s1 + $0x48] sm:$0xff]  ;;  %v1787_v32 = vpack.c.bf16 %v2206_v29, %v2203_v28  ;;  %v2219_v34 = vld [vmem:[%s2127_s11 + $0x78] sm:$0xff]  ;;  %v218_v37 = vld [vmem:[%s2518_s1 + $0x50] sm:$0xff]  ;;  %s1995_s18 = smov [#allocation6]  }
  0x43   : > { %1745 = vmatprep.subr.bf16.mxu0 %v1744_v8  ;;  %v1790_v35 = vpack.c.bf16 %v2219_v34, %v2216_v33  ;;  %v1752_v36 = vpack.c.bf16 %v217_v30, %v216_v19  ;;  %v219_v38 = vld [vmem:[%s2518_s1 + $0x58] sm:$0xff]  ;;  %v220_v40 = vld [vmem:[%s2518_s1 + $0x60] sm:$0xff]  ;;  %v221_v41 = vld [vmem:[%s2518_s1 + $0x68] sm:$0xff]  ;;  %p1923_p12 = pnand %p1922_p6, %p2527_p11  ;;  %s1925_s24 = sshll.u32 %s1995_s18, 4  ;;  %s1926_s24 = int_to_ptr.vmem [resolvable:$false] %s1925_s24 }
  0x44   : > { %v1756_v39 = vpack.c.bf16 %v219_v38, %v218_v37  ;;  %v1760_v42 = vpack.c.bf16 %v221_v41, %v220_v40  ;;  %v222_v43 = vld [vmem:[%s2518_s1 + $0x70] sm:$0xff]  ;;  %v223_v44 = vld [vmem:[%s2518_s1 + $0x78] sm:$0xff]  ;;  %v193_v46 = vld [vmem:[%s2127_s11 + $0x8] sm:$0xff]  ;;  %s224_s11 = sld [smem:[#allocation2]]  ;;  %s1927_s20 = scalar_lea.vmem %s1926_s24, 256 }
  0x45   : > { %v1764_v45 = vpack.c.bf16 %v223_v44, %v222_v43  ;;  %v1769_v47 = vpack.c.bf16 %v193_v46, %v2158_v11  ;;  %p1924_p13 = pneg %p1923_p12  ;;  %p1928_p8 = scmp.lt.s32.totalorder %s2475_s7, %s1926_s24 }
  0x46   : > { %1747 = vmatpush3.bf16.msra.mxu0 %v1744_v8  ;;  %p1929_p10 = scmp.lt.s32.totalorder %s1927_s20, %s1921_s2 }
  0x47   : > { %1749 = vmatprep.subr.bf16.mxu0 %v1748_v25  ;;  %1770 = vmatpush3.bf16.msra.mxu1 %v1769_v47 }
  0x48   : > { %1771 = vmatprep.subr.bf16.mxu1 %v1992_v48  ;;  %p1930_p0 = por %p1929_p10, %p1928_p8 }
  0x4a   : > { %1751 = vmatpush3.bf16.msra.mxu0 %v1748_v25  ;;  %v2261_v50 = vstv %s224_s11  ;;  %p1931_p2 = pnand %p1930_p0, %p1924_p13 }
  0x4b   : > { %1753 = vmatprep.subr.bf16.mxu0 %v1752_v36 }
  0x4e   : > { %1755 = vmatpush3.bf16.msra.mxu0 %v1752_v36 }
  0x4f   : > { %1757 = vmatprep.subr.bf16.mxu0 %v1756_v39 }
  0x52   : > { %1759 = vmatpush3.bf16.msra.mxu0 %v1756_v39 }
  0x53   : > { %1761 = vmatprep.subr.bf16.mxu0 %v1760_v42 }
  0x56   : > { %1763 = vmatpush3.bf16.msra.mxu0 %v1760_v42 }
  0x57   : > { %1765 = vmatprep.subr.bf16.mxu0 %v1764_v45 }
  0x5a   : > { %1767 = vmatpush3.bf16.msra.mxu0 %v1764_v45 }
  0x5d   : > { %1657 = vmatmul.mubr.f32.vlgmr.msra.gmra.mrb[0].mxu0 %v193_v46 }
  0x5e   : > { %1659 = vmatprep.mubr.f32.mxu0 %v2162_v12 }
  0x61   : > { %1660 = vmatmul.mubr.f32.gmra.mrb[2].mxu0 %v2165_v13 }
  0x62   : > { %1662 = vmatprep.mubr.f32.mxu0 %v2168_v14 }
  0x65   : > { %1663 = vmatmul.mubr.f32.gmra.mrb[4].mxu0 %v2173_v16 }
  0x66   : > { %1665 = vmatprep.mubr.f32.mxu0 %v2176_v17 }
  0x69   : > { %1666 = vmatmul.mubr.f32.gmra.mrb[6].mxu0 %v2179_v18 }
  0x6a   : > { %1668 = vmatprep.mubr.f32.mxu0 %v2189_v22 }
  0x6d   : > { %1669 = vmatmul.mubr.f32.gmra.mrb[8].mxu0 %v2192_v23 }
  0x6e   : > { %1671 = vmatprep.mubr.f32.mxu0 %v2195_v24 }
  0x71   : > { %1672 = vmatmul.mubr.f32.gmra.mrb[10].mxu0 %v2200_v27 }
  0x72   : > { %1674 = vmatprep.mubr.f32.mxu0 %v2203_v28 }
  0x75   : > { %1675 = vmatmul.mubr.f32.gmra.mrb[12].mxu0 %v2206_v29 }
  0x76   : > { %1677 = vmatprep.mubr.f32.mxu0 %v2216_v33 }
  0x79   : > { %1678 = vmatmul.mubr.f32.gmra.mrb[14].mxu0 %v2219_v34 }
 0x130   : > { %v1658_v51 = vpop.f32.mrb[0].mxu0 }
 0x131   : > { %v298_v52 = vadd.f32 %v1658_v51, %v2261_v50  ;;  %v292_v53 = vpop.f32.mrb[1].mxu0 }
 0x132   : > { %v293_v54 = vadd.f32 %v292_v53, %v2261_v50 }
 0x133   : > { %v373_v55 = vsel %vm371_vm1, %v298_v52, -inf }
 0x134   : > { %v372_v56 = vsel %vm371_vm1, %v293_v54, -inf  ;;  %v1661_v57 = vpop.f32.mrb[2].mxu0 }
 0x135   : > { %v374_v58 = vmax.f32 %v372_v56, %v373_v55  ;;  %v2268_v59 = vadd.f32 %v1661_v57, %v2261_v50  ;;  %v302_v60 = vpop.f32.mrb[3].mxu0 }
 0x136   : > { %v303_v61 = vadd.f32 %v302_v60, %v2261_v50 }
 0x137   : > { %v375_v62 = vrot.slane %v374_v58, 4  ;;  %v382_v63 = vsel %vm371_vm1, %v2268_v59, -inf }
 0x138   : > { %v381_v0 = vsel %vm371_vm1, %v303_v61, -inf  ;;  %v1664_v1 = vpop.f32.mrb[4].mxu0 }
 0x139   : > { %v376_v2 = vmax.f32 %v374_v58, %v375_v62  ;;  %v383_v3 = vmax.f32 %v381_v0, %v382_v63  ;;  %v2275_v4 = vadd.f32 %v1664_v1, %v2261_v50  ;;  %v312_v5 = vpop.f32.mrb[5].mxu0 }
 0x13a   : > { %v2278_v6 = vadd.f32 %v312_v5, %v2261_v50 }
 0x13b   : > { %v377_v7 = vrot.slane %v376_v2, 2  ;;  %v384_v8 = vrot.slane %v383_v3, 4  ;;  %v391_v9 = vsel %vm371_vm1, %v2275_v4, -inf }
 0x13c   : > { %v390_v10 = vsel %vm371_vm1, %v2278_v6, -inf  ;;  %v1667_v11 = vpop.f32.mrb[6].mxu0 }
 0x13d   : > { %v378_v19 = vmax.f32 %v376_v2, %v377_v7  ;;  %v385_v25 = vmax.f32 %v383_v3, %v384_v8  ;;  %v392_v30 = vmax.f32 %v390_v10, %v391_v9  ;;  %v2285_v36 = vadd.f32 %v1667_v11, %v2261_v50  ;;  %v322_v37 = vpop.f32.mrb[7].mxu0 }
 0x13e   : > { %v2288_v38 = vadd.f32 %v322_v37, %v2261_v50 }
 0x13f   : > { %v379_v39 = vrot.slane %v378_v19, 1  ;;  %v386_v40 = vrot.slane %v385_v25, 2  ;;  %v393_v41 = vrot.slane %v392_v30, 4  ;;  %v400_v42 = vsel %vm371_vm1, %v2285_v36, -inf }
 0x140   : > { %v399_v43 = vsel %vm371_vm1, %v2288_v38, -inf  ;;  %v1670_v44 = vpop.f32.mrb[8].mxu0 }
 0x141   : > { %v380_v45 = vmax.f32 %v378_v19, %v379_v39  ;;  %v387_v46 = vmax.f32 %v385_v25, %v386_v40  ;;  %v394_v47 = vmax.f32 %v392_v30, %v393_v41  ;;  %v401_v51 = vmax.f32 %v399_v43, %v400_v42  ;;  %v332_v53 = vpop.f32.mrb[9].mxu0 }
 0x142   : > { %v2295_v55 = vadd.f32 %v1670_v44, %v2261_v50  ;;  %v2298_v56 = vadd.f32 %v332_v53, %v2261_v50 }
 0x143   : > { %v444_v57 = vsub.f32 %v293_v54, %v380_v45  ;;  %v445_v58 = vsub.f32 %v298_v52, %v380_v45  ;;  %v388_v60 = vrot.slane %v387_v46, 1  ;;  %v395_v62 = vrot.slane %v394_v47, 2 }
 0x144   : > { %v402_v63 = vrot.slane %v401_v51, 4  ;;  %v409_v0 = vsel %vm371_vm1, %v2295_v55, -inf  ;;  %v408_v1 = vsel %vm371_vm1, %v2298_v56, -inf  ;;  %v1673_v2 = vpop.f32.mrb[10].mxu0 }
 0x145   : > { %v460_v3 = vmul.f32 1.442695, %v444_v57  ;;  %v462_v5 = vmul.f32 1.442695, %v445_v58  ;;  %v389_v7 = vmax.f32 %v387_v46, %v388_v60  ;;  %v396_v8 = vmax.f32 %v394_v47, %v395_v62  ;;  %v342_v9 = vpop.f32.mrb[11].mxu0 }
 0x146   : > { %v403_v10 = vmax.f32 %v401_v51, %v402_v63  ;;  %v410_v11 = vmax.f32 %v408_v1, %v409_v0  ;;  %v2305_v54 = vadd.f32 %v1673_v2, %v2261_v50  ;;  %v2308_v52 = vadd.f32 %v342_v9, %v2261_v50 }
 0x147   : > { %1843 = vpow2.f32 %v460_v3  ;;  %v446_v19 = vsub.f32 %v303_v61, %v389_v7  ;;  %v447_v25 = vsub.f32 %v2268_v59, %v389_v7  ;;  %v397_v30 = vrot.slane %v396_v8, 1 }
 0x148   : > { %1845 = vpow2.f32 %v462_v5  ;;  %v404_v37 = vrot.slane %v403_v10, 2  ;;  %v411_v39 = vrot.slane %v410_v11, 4  ;;  %v418_v40 = vsel %vm371_vm1, %v2305_v54, -inf  ;;  %v1676_v41 = vpop.f32.mrb[12].mxu0 }
 0x149   : > { %v464_v42 = vmul.f32 1.442695, %v446_v19  ;;  %v466_v43 = vmul.f32 1.442695, %v447_v25  ;;  %v398_v44 = vmax.f32 %v396_v8, %v397_v30  ;;  %v417_v45 = vsel %vm371_vm1, %v2308_v52, -inf  ;;  %v352_v46 = vpop.f32.mrb[13].mxu0 }
 0x14a   : > { %v405_v47 = vmax.f32 %v403_v10, %v404_v37  ;;  %v412_v51 = vmax.f32 %v410_v11, %v411_v39  ;;  %v419_v61 = vmax.f32 %v417_v45, %v418_v40  ;;  %v2316_v59 = vadd.f32 %v1676_v41, %v2261_v50 }
 0x14b   : > { %1847 = vpow2.f32 %v464_v42  ;;  %v448_v53 = vsub.f32 %v2278_v6, %v398_v44  ;;  %v449_v57 = vsub.f32 %v2275_v4, %v398_v44  ;;  %v2321_v58 = vadd.f32 %v352_v46, %v2261_v50 }
 0x14c   : > { %1849 = vpow2.f32 %v466_v43  ;;  %v406_v60 = vrot.slane %v405_v47, 1  ;;  %v413_v62 = vrot.slane %v412_v51, 2  ;;  %v420_v63 = vrot.slane %v419_v61, 4  ;;  %v1679_v0 = vpop.f32.mrb[14].mxu0 }
 0x14d   : > { %v468_v1 = vmul.f32 1.442695, %v448_v53  ;;  %v470_v2 = vmul.f32 1.442695, %v449_v57  ;;  %v427_v3 = vsel %vm371_vm1, %v2316_v59, -inf  ;;  %v426_v5 = vsel %vm371_vm1, %v2321_v58, -inf }
 0x14e   : > { %v407_v7 = vmax.f32 %v405_v47, %v406_v60  ;;  %v414_v6 = vmax.f32 %v412_v51, %v413_v62  ;;  %v421_v8 = vmax.f32 %v419_v61, %v420_v63  ;;  %v428_v4 = vmax.f32 %v426_v5, %v427_v3  ;;  %v362_v9 = vpop.f32.mrb[15].mxu0 }
 0x14f   : > { %1851 = vpow2.f32 %v468_v1  ;;  %v2328_v10 = vadd.f32 %v1679_v0, %v2261_v50  ;;  %v2331_v11 = vadd.f32 %v362_v9, %v2261_v50 }
 0x150   : > { %1853 = vpow2.f32 %v470_v2  ;;  %v450_v19 = vsub.f32 %v2288_v38, %v407_v7  ;;  %v451_v25 = vsub.f32 %v2285_v36, %v407_v7  ;;  %v415_v30 = vrot.slane %v414_v6, 1 }
 0x151   : > { %v2335_v37 = vpop.eup %1843  ;;  %v422_v39 = vrot.slane %v421_v8, 2  ;;  %v429_v40 = vrot.slane %v428_v4, 4  ;;  %v436_v41 = vsel %vm371_vm1, %v2328_v10, -inf  ;;  %v435_v42 = vsel %vm371_vm1, %v2331_v11, -inf }
 0x152   : > { %v2341_v43 = vpop.eup %1845  ;;  %v492_v50 = vsel %vm371_vm1, %v2335_v37, 0.0  ;;  %v472_v44 = vmul.f32 1.442695, %v450_v19  ;;  %v474_v38 = vmul.f32 1.442695, %v451_v25  ;;  %v416_v45 = vmax.f32 %v414_v6, %v415_v30 }
 0x153   : > { %v493_v36 = vsel %vm371_vm1, %v2341_v43, 0.0  ;;  %v423_v46 = vmax.f32 %v421_v8, %v422_v39  ;;  %v430_v47 = vmax.f32 %v428_v4, %v429_v40  ;;  %v437_v51 = vmax.f32 %v435_v42, %v436_v41 }
 0x154   : > { %v494_v61 = vadd.f32 %v493_v36, %v492_v50  ;;  %1855 = vpow2.f32 %v472_v44  ;;  %v452_v53 = vsub.f32 %v2298_v56, %v416_v45  ;;  %v453_v57 = vsub.f32 %v2295_v55, %v416_v45 }
 0x155   : > { %v2349_v60 = vpop.eup %1847  ;;  %1857 = vpow2.f32 %v474_v38  ;;  %v424_v62 = vrot.slane %v423_v46, 1  ;;  %v431_v63 = vrot.slane %v430_v47, 2  ;;  %v438_v0 = vrot.slane %v437_v51, 4 }
 0x156   : > { %v2351_v1 = vpop.eup %1849  ;;  %v501_v2 = vsel %vm371_vm1, %v2349_v60, 0.0  ;;  %v476_v3 = vmul.f32 1.442695, %v452_v53  ;;  %v478_v5 = vmul.f32 1.442695, %v453_v57  ;;  %v495_v7 = vrot.slane %v494_v61, 4 }
 0x157   : > { %v502_v6 = vsel %vm371_vm1, %v2351_v1, 0.0  ;;  %v425_v56 = vmax.f32 %v423_v46, %v424_v62  ;;  %v432_v8 = vmax.f32 %v430_v47, %v431_v63  ;;  %v439_v55 = vmax.f32 %v437_v51, %v438_v0 }
 0x158   : > { %v503_v4 = vadd.f32 %v502_v6, %v501_v2  ;;  %1859 = vpow2.f32 %v476_v3  ;;  %v496_v9 = vadd.f32 %v495_v7, %v494_v61 }
 0x159   : > { %v2357_v19 = vpop.eup %1851  ;;  %1861 = vpow2.f32 %v478_v5  ;;  %v454_v25 = vsub.f32 %v2308_v52, %v425_v56  ;;  %v455_v30 = vsub.f32 %v2305_v54, %v425_v56  ;;  %v433_v39 = vrot.slane %v432_v8, 1 }
 0x15a   : > { %v2361_v40 = vpop.eup %1853  ;;  %v510_v41 = vsel %vm371_vm1, %v2357_v19, 0.0  ;;  %v440_v42 = vrot.slane %v439_v55, 2  ;;  %v497_v50 = vrot.slane %v496_v9, 2  ;;  %v504_v44 = vrot.slane %v503_v4, 4 }
 0x15b   : > { %v511_v38 = vsel %vm371_vm1, %v2361_v40, 0.0  ;;  %v480_v45 = vmul.f32 1.442695, %v454_v25  ;;  %v482_v36 = vmul.f32 1.442695, %v455_v30  ;;  %v434_v46 = vmax.f32 %v432_v8, %v433_v39 }
 0x15c   : > { %v512_v47 = vadd.f32 %v511_v38, %v510_v41  ;;  %v441_v51 = vmax.f32 %v439_v55, %v440_v42  ;;  %v498_v52 = vadd.f32 %v497_v50, %v496_v9  ;;  %v505_v61 = vadd.f32 %v504_v44, %v503_v4 }
 0x15d   : > { %1863 = vpow2.f32 %v480_v45  ;;  %v456_v54 = vsub.f32 %v2321_v58, %v434_v46  ;;  %v457_v53 = vsub.f32 %v2316_v59, %v434_v46 }
 0x15e   : > { %v2369_v57 = vpop.eup %1855  ;;  %v513_v62 = vrot.slane %v512_v47, 4  ;;  %1865 = vpow2.f32 %v482_v36  ;;  %v442_v63 = vrot.slane %v441_v51, 1  ;;  %v499_v0 = vrot.slane %v498_v52, 1 }
 0x15f   : > { %v2371_v2 = vpop.eup %1857  ;;  %v519_v3 = vsel %vm371_vm1, %v2369_v57, 0.0  ;;  %v484_v5 = vmul.f32 1.442695, %v456_v54  ;;  %v486_v7 = vmul.f32 1.442695, %v457_v53  ;;  %v506_v6 = vrot.slane %v505_v61, 2 }
 0x160   : > { %v520_v56 = vsel %vm371_vm1, %v2371_v2, 0.0  ;;  %v443_v58 = vmax.f32 %v441_v51, %v442_v63  ;;  %v500_v8 = vadd.f32 %v499_v0, %v498_v52  ;;  %v514_v59 = vadd.f32 %v513_v62, %v512_v47 }
 0x161   : > { %v521_v55 = vadd.f32 %v520_v56, %v519_v3  ;;  %1867 = vpow2.f32 %v484_v5  ;;  %v507_v4 = vadd.f32 %v506_v6, %v505_v61 }
 0x162   : > { %v2377_v9 = vpop.eup %1859  ;;  %1869 = vpow2.f32 %v486_v7  ;;  %v458_v25 = vsub.f32 %v2331_v11, %v443_v58  ;;  %v459_v30 = vsub.f32 %v2328_v10, %v443_v58  ;;  %v515_v39 = vrot.slane %v514_v59, 2 }
 0x163   : > { %v2381_v41 = vpop.eup %1861  ;;  %v522_v42 = vrot.slane %v521_v55, 4  ;;  %v528_v50 = vsel %vm371_vm1, %v2377_v9, 0.0  ;;  %1871 = vrcp.f32 %v500_v8  ;;  %v508_v44 = vrot.slane %v507_v4, 1 }
 0x164   : > { %v529_v38 = vsel %vm371_vm1, %v2381_v41, 0.0  ;;  %v488_v45 = vmul.f32 1.442695, %v458_v25  ;;  %v490_v36 = vmul.f32 1.442695, %v459_v30  ;;  %v516_v46 = vadd.f32 %v515_v39, %v514_v59 }
 0x165   : > { %v530_v47 = vadd.f32 %v529_v38, %v528_v50  ;;  %v509_v51 = vadd.f32 %v508_v44, %v507_v4  ;;  %v523_v11 = vadd.f32 %v522_v42, %v521_v55 }
 0x166   : > { %1873 = vpow2.f32 %v488_v45  ;;  %v517_v10 = vrot.slane %v516_v46, 1 }
 0x167   : > { %v2387_v52 = vpop.eup %1863  ;;  %v531_v61 = vrot.slane %v530_v47, 4  ;;  %1875 = vpow2.f32 %v490_v36  ;;  %v524_v54 = vrot.slane %v523_v11, 2 }
 0x168   : > { %v2389_v53 = vpop.eup %1865  ;;  %v537_v62 = vsel %vm371_vm1, %v2387_v52, 0.0  ;;  %1877 = vrcp.f32 %v509_v51  ;;  %v518_v63 = vadd.f32 %v517_v10, %v516_v46 }
 0x169   : > { %v538_v0 = vsel %vm371_vm1, %v2389_v53, 0.0  ;;  %v525_v3 = vadd.f32 %v524_v54, %v523_v11  ;;  %v532_v5 = vadd.f32 %v531_v61, %v530_v47 }
 0x16a   : > { %v539_v7 = vadd.f32 %v538_v0, %v537_v62  ;;  %1879 = vrcp.f32 %v518_v63 }
 0x16b   : > { %v2395_v6 = vpop.eup %1867  ;;  %v526_v56 = vrot.slane %v525_v3, 1  ;;  %v533_v58 = vrot.slane %v532_v5, 2 }
 0x16c   : > { %v2397_v8 = vpop.eup %1869  ;;  %v540_v59 = vrot.slane %v539_v7, 4  ;;  %v546_v55 = vsel %vm371_vm1, %v2395_v6, 0.0 }
 0x16d   : > { %v1872_v4 = vpop.eup %1871  ;;  %v547_v25 = vsel %vm371_vm1, %v2397_v8, 0.0  ;;  %v527_v30 = vadd.f32 %v526_v56, %v525_v3  ;;  %v534_v39 = vadd.f32 %v533_v58, %v532_v5 }
 0x16e   : > { %v548_v42 = vadd.f32 %v547_v25, %v546_v55  ;;  %v572_v50 = vmul.f32 %v1872_v4, %v2335_v37  ;;  %v573_v44 = vmul.f32 %v1872_v4, %v2341_v43  ;;  %v541_v38 = vadd.f32 %v540_v59, %v539_v7 }
 0x16f   : > { %1881 = vrcp.f32 %v527_v30  ;;  %v535_v45 = vrot.slane %v534_v39, 1 }
 0x170   : > { %v1874_v36 = vpop.eup %1873  ;;  %v549_v46 = vrot.slane %v548_v42, 4  ;;  %588 = vxpose.xlu0.b32.start [1/2] (short) (narrow) %v572_v50, 8  ;;  %v542_v47 = vrot.slane %v541_v38, 2 }
 0x171   : > { %v1876_v51 = vpop.eup %1875  ;;  %v555_v11 = vsel %vm371_vm1, %v1874_v36, 0.0  ;;  %v536_v10 = vadd.f32 %v535_v45, %v534_v39 }
 0x172   : > { %v1878_v61 = vpop.eup %1877  ;;  %v556_v54 = vsel %vm371_vm1, %v1876_v51, 0.0  ;;  %v543_v62 = vadd.f32 %v542_v47, %v541_v38  ;;  %v550_v63 = vadd.f32 %v549_v46, %v548_v42 }
 0x173   : > { %v557_v0 = vadd.f32 %v556_v54, %v555_v11  ;;  %v574_v37 = vmul.f32 %v1878_v61, %v2349_v60  ;;  %v575_v43 = vmul.f32 %v1878_v61, %v2351_v1  ;;  %1883 = vrcp.f32 %v536_v10 }
 0x174   : > { %v1880_v3 = vpop.eup %1879  ;;  %589 = vxpose.xlu0.b32.end [2/2] (short) (narrow) %v573_v44, 8  ;;  %v544_v5 = vrot.slane %v543_v62, 1  ;;  %v551_v7 = vrot.slane %v550_v63, 2 }
 0x175   : > { %v558_v56 = vrot.slane %v557_v0, 4  ;;  %694 = vxpose.xlu1.b32.start [1/2] (short) (narrow) %v574_v37, 8  ;;  %v576_v58 = vmul.f32 %v1880_v3, %v2357_v19  ;;  %v577_v59 = vmul.f32 %v1880_v3, %v2361_v40 }
 0x176   : > { %v545_v55 = vadd.f32 %v544_v5, %v543_v62  ;;  %v552_v4 = vadd.f32 %v551_v7, %v550_v63 }
 0x177   : > { %v559_v25 = vadd.f32 %v558_v56, %v557_v0 }
 0x178   : > { %799 = vxpose.xlu0.b32.start [1/2] (short) (narrow) %v576_v58, 8  ;;  %1885 = vrcp.f32 %v545_v55  ;;  %v553_v30 = vrot.slane %v552_v4, 1 }
 0x179   : > { %v1882_v60 = vpop.eup %1881  ;;  %695 = vxpose.xlu1.b32.end [2/2] (short) (narrow) %v575_v43, 8  ;;  %v560_v1 = vrot.slane %v559_v25, 2 }
 0x17a   : > { %v578_v39 = vmul.f32 %v1882_v60, %v2369_v57  ;;  %v579_v42 = vmul.f32 %v1882_v60, %v2371_v2  ;;  %v554_v50 = vadd.f32 %v553_v30, %v552_v4 }
 0x17b   : > { %v561_v44 = vadd.f32 %v560_v1, %v559_v25 }
 0x17c   : > { %800 = vxpose.xlu0.b32.end [2/2] (short) (narrow) %v577_v59, 8  ;;  %1887 = vrcp.f32 %v554_v50 }
 0x17d   : > { %v1884_v19 = vpop.eup %1883  ;;  %904 = vxpose.xlu1.b32.start [1/2] (short) (narrow) %v578_v39, 8  ;;  %v562_v40 = vrot.slane %v561_v44, 1 }
 0x17e   : > { %v580_v38 = vmul.f32 %v1884_v19, %v2377_v9  ;;  %v581_v45 = vmul.f32 %v1884_v19, %v2381_v41 }
 0x17f   : > { %v563_v46 = vadd.f32 %v562_v40, %v561_v44 }
 0x180   : > { %1009 = vxpose.xlu0.b32.start [1/2] (short) (narrow) %v580_v38, 8 }
 0x181   : > { %905 = vxpose.xlu1.b32.end [2/2] (short) (narrow) %v579_v42, 8  ;;  %1889 = vrcp.f32 %v563_v46 }
 0x182   : > { %v1886_v47 = vpop.eup %1885 }
 0x183   : > { %v582_v57 = vmul.f32 %v1886_v47, %v2387_v52  ;;  %v583_v2 = vmul.f32 %v1886_v47, %v2389_v53 }
 0x184   : > { %1010 = vxpose.xlu0.b32.end [2/2] (short) (narrow) %v581_v45, 8 }
 0x185   : > { %1114 = vxpose.xlu1.b32.start [1/2] (short) (narrow) %v582_v57, 8 }
 0x186   : > { %v1888_v11 = vpop.eup %1887 }
 0x187   : > { %v584_v10 = vmul.f32 %v1888_v11, %v2395_v6  ;;  %v585_v61 = vmul.f32 %v1888_v11, %v2397_v8 }
 0x189   : > { %1115 = vxpose.xlu1.b32.end [2/2] (short) (narrow) %v583_v2, 8  ;;  %1219 = vxpose.xlu0.b32.start [1/2] (short) (narrow) %v584_v10, 8 }
 0x18b   : > { %v1890_v9 = vpop.eup %1889 }
 0x18c   : > { %v586_v41 = vmul.f32 %v1890_v9, %v1874_v36  ;;  %v587_v54 = vmul.f32 %v1890_v9, %v1876_v51 }
 0x18d   : > { %1220 = vxpose.xlu0.b32.end [2/2] (short) (narrow) %v585_v61, 8 }
 0x18e   : > { %1324 = vxpose.xlu1.b32.start [1/2] (short) (narrow) %v586_v41, 8 }
 0x192   : > { %1325 = vxpose.xlu1.b32.end [2/2] (short) (narrow) %v587_v54, 8 }
 0x1f0   : > { %v604_v62 = vpop.trf.xlu0 }
 0x1f1   : > { %1685 = vmatmul.mubr.msk.f32.vlgmr.msra.gmra.mrb[0].mxu1 %vm620_vm2, %v604_v62 }
 0x1f2   : > { %1773 = vmatpush3.bf16.msra.mxu1 %v1772_v15  ;;  %1691 = vmatprep.mubr.msk.f32.mxu1 %vm1993_vm0, %v1994_v49 }
 0x1f3   : > { %1774 = vmatprep.subr.bf16.mxu1 %v1992_v48 }
 0x1f5   : > { %v710_v52 = vpop.trf.xlu1 }
 0x1f6   : > { %1692 = vmatmul.mubr.msk.f32.vlgmr.msra.gmra.mrb[2].mxu1 %vm620_vm2, %v710_v52 }
 0x1f7   : > { %1776 = vmatpush3.bf16.msra.mxu1 %v1775_v20  ;;  %1698 = vmatprep.mubr.msk.f32.mxu1 %vm1993_vm0, %v1994_v49 }
 0x1f8   : > { %1777 = vmatprep.subr.bf16.mxu1 %v1992_v48  ;;  %v815_v53 = vpop.trf.xlu0 }
 0x1fa   : > { %1699 = vmatmul.mubr.msk.f32.vlgmr.msra.gmra.mrb[4].mxu1 %vm620_vm2, %v815_v53 }
 0x1fb   : > { %1779 = vmatpush3.bf16.msra.mxu1 %v1778_v21  ;;  %1705 = vmatprep.mubr.msk.f32.mxu1 %vm1993_vm0, %v1994_v49 }
 0x1fc   : > { %1780 = vmatprep.subr.bf16.mxu1 %v1992_v48 }
 0x1fd   : > { %v920_v12 = vpop.trf.xlu1 }
 0x1fe   : > { %1706 = vmatmul.mubr.msk.f32.vlgmr.msra.gmra.mrb[6].mxu1 %vm620_vm2, %v920_v12 }
 0x1ff   : > { %1782 = vmatpush3.bf16.msra.mxu1 %v1781_v26  ;;  %1712 = vmatprep.mubr.msk.f32.mxu1 %vm1993_vm0, %v1994_v49 }
 0x200   : > { %1783 = vmatprep.subr.bf16.mxu1 %v1992_v48  ;;  %v1025_v13 = vpop.trf.xlu0 }
 0x202   : > { %1713 = vmatmul.mubr.msk.f32.vlgmr.msra.gmra.mrb[8].mxu1 %vm620_vm2, %v1025_v13 }
 0x203   : > { %1785 = vmatpush3.bf16.msra.mxu1 %v1784_v31  ;;  %1719 = vmatprep.mubr.msk.f32.mxu1 %vm1993_vm0, %v1994_v49 }
 0x204   : > { %1786 = vmatprep.subr.bf16.mxu1 %v1992_v48 }
 0x205   : > { %v1130_v14 = vpop.trf.xlu1 }
 0x206   : > { %1720 = vmatmul.mubr.msk.f32.vlgmr.msra.gmra.mrb[10].mxu1 %vm620_vm2, %v1130_v14 }
 0x207   : > { %1788 = vmatpush3.bf16.msra.mxu1 %v1787_v32  ;;  %1726 = vmatprep.mubr.msk.f32.mxu1 %vm1993_vm0, %v1994_v49 }
 0x208   : > { %1789 = vmatprep.subr.bf16.mxu1 %v1992_v48 }
 0x209   : > { %v1235_v15 = vpop.trf.xlu0 }
 0x20a   : > { %1727 = vmatmul.mubr.msk.f32.vlgmr.msra.gmra.mrb[12].mxu1 %vm620_vm2, %v1235_v15 }
 0x20b   : > { %1791 = vmatpush3.bf16.msra.mxu1 %v1790_v35  ;;  %1733 = vmatprep.mubr.msk.f32.mxu1 %vm1993_vm0, %v1994_v49 }
 0x20e   : > { %v1340_v16 = vpop.trf.xlu1 }
 0x20f   : > { %1734 = vmatmul.mubr.msk.f32.vlgmr.msra.gmra.mrb[14].mxu1 %vm620_vm2, %v1340_v16 }
 0x2c4   : > { %v690_v17 = vpop.f32.mrb[0].mxu1 }
 0x2c5   : > { %v1686_v18 = vpop.f32.mrb[1].mxu1 }
 0x2c9   : > { %v795_v20 = vpop.f32.mrb[2].mxu1 }
 0x2ca   : > { %v1437_v21 = vrot.slane %v795_v20, 7  ;;  %v1693_v22 = vpop.f32.mrb[3].mxu1 }
 0x2cc   : > { %v1439_v23 = vsel %vm1438_vm3, %v1437_v21, %v690_v17 }
 0x2cd   : > { %v900_v24 = vpop.f32.mrb[4].mxu1 }
 0x2ce   : > { %v1440_v26 = vrot.slane %v900_v24, 6  ;;  %v1700_v27 = vpop.f32.mrb[5].mxu1 }
 0x2d0   : > { %v1442_v28 = vsel %vm1441_vm4, %v1440_v26, %v1439_v23 }
 0x2d1   : > { %v1005_v29 = vpop.f32.mrb[6].mxu1 }
 0x2d2   : > { %v1443_v31 = vrot.slane %v1005_v29, 5  ;;  %v1707_v32 = vpop.f32.mrb[7].mxu1 }
 0x2d4   : > { %v1445_v33 = vsel %vm1444_vm5, %v1443_v31, %v1442_v28 }
 0x2d5   : > { %v1110_v34 = vpop.f32.mrb[8].mxu1 }
 0x2d6   : > { %v1446_v35 = vrot.slane %v1110_v34, 4  ;;  %v1714_v48 = vpop.f32.mrb[9].mxu1 }
 0x2d8   : > { %v1448_v49 = vsel %vm1447_vm6, %v1446_v35, %v1445_v33 }
 0x2d9   : > { %v1215_v6 = vpop.f32.mrb[10].mxu1 }
 0x2da   : > { %v1449_v8 = vrot.slane %v1215_v6, 3  ;;  %v1721_v36 = vpop.f32.mrb[11].mxu1 }
 0x2dc   : > { %v1451_v51 = vsel %vm1450_vm7, %v1449_v8, %v1448_v49 }
 0x2dd   : > { %v1320_v63 = vpop.f32.mrb[12].mxu1 }
 0x2de   : > { %v1452_v0 = vrot.slane %v1320_v63, 2  ;;  %v1728_v37 = vpop.f32.mrb[13].mxu1 }
 0x2e0   : > { %v1454_v43 = vsel %vm1453_vm8, %v1452_v0, %v1451_v51 }
 0x2e2   : > { %v1425_v3 = vpop.f32.mrb[14].mxu1 }
 0x2e3   : > { %v1455_v5 = vrot.slane %v1425_v3, 1  ;;  %v1735_v7 = vpop.f32.mrb[15].mxu1 }
 0x2e5   : > { %v1457_v56 = vsel %vm1456_vm9, %v1455_v5, %v1454_v43 }
 0x2e6   : > { %1459 = vst [vmem:[%s190_s5] sm:$0xff] %v1457_v56 }
 0x2e7   : > { %1934 = shalt.err (!%p1931_p2)
}
 0x2e8   : > { %s1935_s4 = scalar_lea.hbm %s2473_s12, 128  ;;  %s1939_s27 = scalar_lea.hbm %s2520_s3, 256 }
 0x2e9   : > { %p1936_p4 = scmp.ne.s32.totalorder %s2473_s12, %s1935_s4  ;;  %p1940_p9 = scmp.lt.u32.totalorder %s2473_s12, %s2520_s3 }
 0x2ea   : > { %p1941_p1 = scmp.lt.u32.totalorder %s1939_s27, %s1935_s4  ;;  %p1943_p6 = scmp.lt.u32.totalorder %s1935_s4, %s2473_s12 }
 0x2eb   : > { %p1937_p5 = pnand %p1936_p4, %p2527_p11 }
 0x2ec   : > { %p1942_p3 = por %p1941_p1, %p1940_p9 }
 0x2ed   : > { %p1938_p7 = pneg %p1937_p5 }
 0x2ee   : > { %p1944_p12 = por %p1943_p6, %p1942_p3 }
 0x2f0   : > { %p1945_p13 = pnand %p1944_p12, %p1938_p7 }
 0x2f2   : > { %1948 = shalt.err (!%p1945_p13)
}
 0x2f3   : > { %1794 = dma.vmem_to_hbm [thread:$0]  (%p2527_p11), %s2475_s7, 128, %s2473_s12, %s1461_s13  }
 0x2f4 PF: > { %s1486_s30 = sand.u32 1, %s1975_s14   ;;  %p2528_p8 = scmp.ne.s32.totalorder %s2525_s26, 0 }
 0x2f5   : > { %p2529_p10 = scmp.ge.s32.totalorder %s1987_s17, 2  ;;  %s1487_s11 = scalar_lea.sflag [#allocation5], %s1486_s30 }
 0x2f7   : > { %p1801_p0 = pnand %p2529_p10, %p2528_p8 }
 0x2f9   : > { %1970 = dma.done.wait (!%p1801_p0), %s1487_s11, 128  }
 0x2fa   : > { %1972 = vsyncadd (!%p1801_p0), %s1487_s11, 4294967168  ;;  %p17_p2 = scmp.ge.s32.totalorder %s2044_s19, 4   ;;  %s2530_s14 = smov %s1979_s15 }
 0x2fb   : > { %s2531_s15 = smov %s1983_s16  ;;  %s2532_s16 = smov %s2056_s22 }
 0x2fc   : > { %s2533_s17 = smov %s2044_s19  ;;  %19 = sbr.rel (!%p17_p2) target bundleno = 7 (0x7), region = 77 }
 0x303   :  { %1492 = vsyncpa [#allocation4], 1 }
 0x304   :  { %1494 = vsyncpa [#allocation4 + $0x1], 1 }
 0x305   :  { %1495 = vsyncpa [#allocation5], 1 }
 0x306   :  { %1497 = vsyncpa [#allocation5 + $0x1], 1 }

</bundles_post_ra>
